<compile_context>
chip_gen: v7x
topology: tpu7x:2x2x1
jax: 0.10.0
libtpu: 0.0.40
codegen_flags: <defaults>
</compile_context>

<pallas_src>
import functools

import jax
import jax.numpy as jnp
from jax.experimental import pallas as pl
from jax.experimental.pallas import tpu as pltpu


def _patch_proj_kernel(patches_ref, w_ref, pos_ref, out_ref):
    # patches_ref: (TM, P)  bf16 — one token tile of flattened patches
    #                              (token 0 of the first tile is the all-zero
    #                               cls slot).
    # w_ref:       (P, E)   bf16 — projection weight (constant across grid).
    # pos_ref:     (TM, E)  f32  — positions (+ bias on patch rows; cls token
    #                              folded into row 0), this token tile.
    # out_ref:     (TM, E)       — full output tile, row-0-aligned store.
    proj = jnp.dot(
        patches_ref[...], w_ref[...], preferred_element_type=jnp.float32
    )
    out_ref[...] = (proj + pos_ref[...]).astype(out_ref.dtype)


def patch_embedding(x, w, bias, cls_token, positions, *, patch_size,
                    block_m=256, out_dtype=jnp.float32):
    """x: (B, C, H, W) -> (B, num_patches + 1, emb_size).

    w:         (patch_size*patch_size*C, E)   (transposed nn.Linear weight)
    bias:      (E,)
    cls_token: (1, 1, E) or (1, E)
    positions: (num_patches + 1, E)
    out_dtype: jnp.float32 matches the PyTorch module; use jnp.bfloat16 in a
               bf16 ViT stack to halve output HBM traffic.
    """
    b, c, hh, ww = x.shape
    h = hh // patch_size
    wp = ww // patch_size
    n = h * wp
    n_tok = n + 1                        # + cls slot, written by the kernel
    p_dim = patch_size * patch_size * c
    emb = w.shape[1]

    # einops 'b c (h s1) (w s2) -> b (h w) (s1 s2 c)', plus one all-zero row
    # per batch element at token 0 (the cls slot).  Wrapper glue, no FLOPs;
    # exposed to XLA input fusion below so it need not round-trip HBM.
    patches = x.reshape(b, c, h, patch_size, wp, patch_size)
    patches = jnp.transpose(patches, (0, 2, 4, 3, 5, 1))         # b h w s1 s2 c
    patches = patches.reshape(b, n, p_dim)
    patches = jnp.pad(patches, ((0, 0), (1, 0), (0, 0)))         # row 0 = 0
    patches = patches.astype(jnp.bfloat16)                       # MXU operand

    w_bf16 = w.astype(jnp.bfloat16)

    # Positional operand (batch-independent, f32 exact):
    #   row 0      = cls_token + positions[0]   (no Linear bias)
    #   rows 1..N  = positions[1:] + bias
    pos_full = jnp.concatenate(
        [
            (cls_token.reshape(1, emb) + positions[0:1]).astype(jnp.float32),
            (positions[1:] + bias[None, :]).astype(jnp.float32),
        ],
        axis=0,
    )                                                             # (N+1, E)

    # Token-dimension tiling; a partial last tile (if any) is masked by Pallas.
    tm = n_tok if n_tok <= block_m else block_m
    n_tiles = pl.cdiv(n_tok, tm)

    return pl.pallas_call(
        _patch_proj_kernel,
        out_shape=jax.ShapeDtypeStruct((b, n_tok, emb), out_dtype),
        grid_spec=pltpu.PrefetchScalarGridSpec(
            num_scalar_prefetch=0,
            # Token tiles outer, batch inner: pos block index (j, 0) is
            # constant across the inner axis -> re-fetched only n_tiles times.
            grid=(n_tiles, b),
            in_specs=[
                # batch dim squeezed out of the kernel view
                pl.BlockSpec((None, tm, p_dim), lambda j, i: (i, j, 0)),
                # constant block index -> fetched once
                pl.BlockSpec((p_dim, emb), lambda j, i: (0, 0)),
                pl.BlockSpec((tm, emb), lambda j, i: (j, 0)),
            ],
            out_specs=pl.BlockSpec((None, tm, emb), lambda j, i: (i, j, 0)),
        ),
        compiler_params=pltpu.CompilerParams(
            dimension_semantics=("parallel", "parallel"),
            vmem_limit_bytes=48 * 1024 * 1024,
            # Let XLA fuse the patch rearrange into the kernel's first operand
            # instead of materializing it in HBM (review item #1).
            allow_input_fusion=[True, False, False],
        ),
    )(patches, w_bf16, pos_full)


if __name__ == "__main__":
    # Small shapes consistent with the module: in_channels=4, patch_size=4,
    # img_size=16, emb_size=32, batch=2  ->  num_patches=16, patch_dim=64.
    B, C, IMG, PATCH, EMB = 2, 4, 16, 4, 32
    N = (IMG // PATCH) ** 2            # 16
    P_DIM = PATCH * PATCH * C          # 64

    key = jax.random.PRNGKey(0)
    kx, kw, kb, kc, kp = jax.random.split(key, 5)

    x = jax.random.normal(kx, (B, C, IMG, IMG), dtype=jnp.float32)
    # nn.Linear(P_DIM, EMB): torch stores (EMB, P_DIM); we keep the transposed
    # (P_DIM, EMB) layout for the right-hand matmul operand.
    w = jax.random.normal(kw, (P_DIM, EMB), dtype=jnp.float32) * 0.02
    bias = jax.random.normal(kb, (EMB,), dtype=jnp.float32) * 0.02
    cls_token = jax.random.normal(kc, (1, 1, EMB), dtype=jnp.float32)
    positions = jax.random.normal(kp, (N + 1, EMB), dtype=jnp.float32)

    # jit the wrapper so the rearrange is visible to XLA input fusion.
    fn = jax.jit(functools.partial(patch_embedding, patch_size=PATCH))
    out = fn(x, w, bias, cls_token, positions)
    out = jax.block_until_ready(out)

    # Pure-JAX f32 reference of the module's forward (kernel uses a bf16
    # matmul with f32 accumulation, hence the loosened tolerance).
    patches = x.reshape(B, C, IMG // PATCH, PATCH, IMG // PATCH, PATCH)
    patches = jnp.transpose(patches, (0, 2, 4, 3, 5, 1)).reshape(B, N, P_DIM)
    ref_proj = patches @ w + bias
    ref = jnp.concatenate(
        [jnp.broadcast_to(cls_token.reshape(1, 1, EMB), (B, 1, EMB)), ref_proj],
        axis=1,
    ) + positions[None]

    assert out.shape == (B, N + 1, EMB), out.shape
    err = float(jnp.max(jnp.abs(out.astype(jnp.float32) - ref)))
    assert jnp.allclose(out.astype(jnp.float32), ref, atol=3e-2, rtol=3e-2), err

    print("KERNEL_OK")
</pallas_src>

<mosaic_0001>
module attributes {stable_mosaic.version = 11 : i64} {
  func.func @_patch_proj_kernel(%arg0: i32, %arg1: i32, %arg2: memref<1x17x64xbf16, #tpu.memory_space<vmem>>, %arg3: memref<64x32xbf16, #tpu.memory_space<vmem>>, %arg4: memref<17x32xf32, #tpu.memory_space<vmem>>, %arg5: memref<1x17x32xf32, #tpu.memory_space<vmem>>) attributes {dimension_semantics = [#tpu.dimension_semantics<parallel>, #tpu.dimension_semantics<parallel>], iteration_bounds = array<i64: 1, 2>, scalar_prefetch = 0 : i64, scratch_operands = 0 : i64, tpu.core_type = #tpu.core_type<tc>, window_params = [{transform_indices = @transform_0, window_bounds = array<i64: 1, 17, 64>}, {pipeline_mode = #tpu.pipeline_mode<synchronous>, transform_indices = @transform_1, window_bounds = array<i64: 64, 32>}, {transform_indices = @transform_2, window_bounds = array<i64: 17, 32>}, {transform_indices = @transform_3, window_bounds = array<i64: 1, 17, 32>}]} {
    %c0 = arith.constant 0 : index
    %c0_0 = arith.constant 0 : index
    %c0_1 = arith.constant 0 : index
    %0 = vector.load %arg2[%c0, %c0_0, %c0_1] : memref<1x17x64xbf16, #tpu.memory_space<vmem>>, vector<1x17x64xbf16>
    %1 = vector.shape_cast %0 : vector<1x17x64xbf16> to vector<17x64xbf16>
    %c0_2 = arith.constant 0 : index
    %c0_3 = arith.constant 0 : index
    %2 = vector.load %arg3[%c0_2, %c0_3] : memref<64x32xbf16, #tpu.memory_space<vmem>>, vector<64x32xbf16>
    %cst = arith.constant dense<0.000000e+00> : vector<17x32xf32>
    %3 = tpu.matmul %1, %2, %cst {dimension_numbers = #tpu.dot_dimension_numbers<[1], [0], [0], [1], [0, 0, 1, 1], [], []>} : vector<17x64xbf16>, vector<64x32xbf16>, vector<17x32xf32> -> vector<17x32xf32>
    %c0_4 = arith.constant 0 : index
    %c0_5 = arith.constant 0 : index
    %4 = vector.load %arg4[%c0_4, %c0_5] : memref<17x32xf32, #tpu.memory_space<vmem>>, vector<17x32xf32>
    %5 = arith.addf %3, %4 : vector<17x32xf32>
    %c0_6 = arith.constant 0 : index
    %c0_7 = arith.constant 0 : index
    %c0_8 = arith.constant 0 : index
    %6 = vector.load %arg5[%c0_6, %c0_7, %c0_8] : memref<1x17x32xf32, #tpu.memory_space<vmem>>, vector<1x17x32xf32>
    %7 = vector.shape_cast %6 : vector<1x17x32xf32> to vector<17x32xf32>
    %8 = vector.shape_cast %5 : vector<17x32xf32> to vector<1x17x32xf32>
    tpu.vector_store %arg5[%c0_6, %c0_7, %c0_8], %8 {strides = array<i32>} : memref<1x17x32xf32, #tpu.memory_space<vmem>>, vector<1x17x32xf32>,
    return
  }
  func.func @transform_0(%arg0: i32, %arg1: i32) -> (i32, i32, i32) {
    %c0_i32 = arith.constant 0 : i32
    %c0_i32_0 = arith.constant 0 : i32
    return %arg1, %arg0, %c0_i32 : i32, i32, i32
  }
  func.func @transform_1(%arg0: i32, %arg1: i32) -> (i32, i32) {
    %c0_i32 = arith.constant 0 : i32
    %c0_i32_0 = arith.constant 0 : i32
    %c0_i32_1 = arith.constant 0 : i32
    return %c0_i32, %c0_i32_0 : i32, i32
  }
  func.func @transform_2(%arg0: i32, %arg1: i32) -> (i32, i32) {
    %c0_i32 = arith.constant 0 : i32
    %c0_i32_0 = arith.constant 0 : i32
    return %arg0, %c0_i32 : i32, i32
  }
  func.func @transform_3(%arg0: i32, %arg1: i32) -> (i32, i32, i32) {
    %c0_i32 = arith.constant 0 : i32
    %c0_i32_0 = arith.constant 0 : i32
    return %arg1, %arg0, %c0_i32 : i32, i32, i32
  }
}

</mosaic_0001>

<bundles_post_ra>
// kernel: patch_embedding.2
= control target key start
LH: loop header
LB: loop body
LE: loop exit
PB: predicated region body
PF: predicated region fallthrough
CT: control target
= control target key end

     0   :  { %s653_s17 = smov 0   ;;  %s655_s18 = smov 0   ;;  %s715_s0 = inlined_call_operand.vmem [shape: bf16[64,32], index: 0, kind: input, shape index: {}]   ;;  %s716_s1 = inlined_call_operand.vmem [shape: f32[17,32], index: 1, kind: input, shape index: {}]   ;;  %s717_s2 = inlined_call_operand.vmem [shape: bf16[2,16,64], index: 2, kind: input, shape index: {}]   ;;  %s718_s3 = inlined_call_operand.<no memory space> [shape: bf16[], index: 3, kind: input, shape index: {}]   ;;  %s719_s4 = inlined_call_operand.vmem [shape: f32[2,17,32], index: 4, kind: output, shape index: {}]  }
   0x1   :  { %v9_v0 = vstv %s718_s3  ;;  %s657_s19 = smov 0  }
   0x2   :  { %v651_v1 = vunpack.i.l.bf16 %v9_v0 }
   0x3 LB: > { %s28_s3 = sadd.s32 1, %s616_s18  ;;  %p532_p0 = scmp.ge.s32.totalorder %s620_s19, 1  ;;  %s620_s19 = sphi %s657_s19, %s19_s19   ;;  %s616_s18 = sphi %s655_s18, %s721_s18   ;;  %s612_s17 = sphi %s653_s17, %s720_s17  }
   0x4   : > { %p29_p1 = scmp.ge.s32.totalorder %s28_s3, 2  ;;  %p182_p2 = scmp.lt.s32.totalorder %s620_s19, 3 }
   0x6   : > { %s723_s3 = smov (%p29_p1, %s28_s3), 0  ;;  %p183_p3 = pnand %p532_p0, %p182_p2 }
   0x8   : > { %186 = sbr.rel (%p183_p3) target bundleno = 258 (0x102), region = 32 }
   0xf   : > { %v592_v2 = vld [vmem:[%s715_s0] sm:$0xff]   ;;  %p227_p4 = scmp.lt.s32.totalorder %s612_s17, 1  ;;  %v284_v3 = vlaneseq  ;;  %v593_v4 = vld [vmem:[%s715_s0 + $0x8] sm:$0xff]   ;;  %v594_v5 = vld [vmem:[%s715_s0 + $0x10] sm:$0xff]   ;;  %vm289_vm1 = vcmask 1046528   ;;  %v622_v19 = vmov 0.0  }
  0x10   : > { %554 = vmatprep.subr.bf16.mxu0 %v592_v2  ;;  %v595_v7 = vld [vmem:[%s715_s0 + $0x18] sm:$0xff]   ;;  %vm365_vm2 = vcmask 523264   ;;  %v332_v25 = vld [vmem:[%s716_s1 + $0x10] sm:$0x1]  ;;  %v330_v26 = vld [vmem:[%s716_s1] sm:$0xff]  ;;  %vm423_vm3 = vcmask 253952  }
  0x11   : > { %s725_s17 = smov (!%p227_p4, %s612_s17), 1  ;;  %555 = vmatpush3.bf16.msra.mxu0 %v592_v2  ;;  %v285_v6 = vand.u32 127, %v284_v3  ;;  %vm420_vm4 = vcmask 261120   ;;  %v331_v30 = vld [vmem:[%s716_s1 + $0x8] sm:$0xff] }
  0x12   : > { %556 = vmatprep.subr.bf16.mxu0 %v593_v4  ;;  %s533_s26 = sshll.u32 %s725_s17, 1  ;;  %s566_s8 = smul.u32 24, %s725_s17 }
  0x13   : > { %s233_s27 = sadd.s32 4294967295, %s533_s26  ;;  %vm287_vm0 = vcmp.lt.s32.totalorder %v285_v6, 64 }
  0x14   : > { %s534_s28 = sshll.u32 %s233_s27, 2  ;;  %s254_s15 = scalar_lea.vmem %s719_s4, %s566_s8 }
  0x15   : > { %557 = vmatpush3.bf16.msra.mxu0 %v593_v4  ;;  %s235_s5 = scalar_lea.vmem %s717_s2, %s534_s28 }
  0x16   : > { %558 = vmatprep.subr.bf16.mxu0 %v594_v5  ;;  %v536_v8 = vld [vmem:[%s235_s5 + $0x4] sm:$0xff]  }
  0x17   : > { %v282_v9 = vunpack.c.l.bf16 %v536_v8  ;;  %v297_v10 = vunpack.c.h.bf16 %v536_v8 }
  0x19   : > { %559 = vmatpush3.bf16.msra.mxu0 %v594_v5  ;;  %v288_v11 = vsel %vm287_vm0, %v282_v9, %v651_v1  ;;  %v303_v12 = vsel %vm287_vm0, %v297_v10, %v651_v1 }
  0x1a   : > { %560 = vmatprep.subr.bf16.mxu0 %v595_v7  ;;  %v290_v13 = vsel %vm289_vm1, %v288_v11, %v651_v1  ;;  %v305_v14 = vsel %vm289_vm1, %v303_v12, %v288_v11  ;;  %v312_v15 = vsel %vm289_vm1, %v651_v1, %v303_v12 }
  0x1b   : > { %v291_v16 = vrot.slane %v290_v13, 7  ;;  %v306_v17 = vrot.slane %v305_v14, 7  ;;  %v313_v18 = vrot.slane %v312_v15, 7 }
  0x1d   : > { %561 = vmatpush3.bf16.msra.mxu0 %v595_v7  ;;  %v292_v20 = vpack.c.bf16 %v622_v19, %v291_v16  ;;  %v308_v21 = vpack.c.bf16 %v622_v19, %v306_v17  ;;  %v315_v22 = vpack.c.bf16 %v622_v19, %v313_v18 }
  0x1f   : > { %294 = vst [vmem:[#allocation7] sm:$0xf] %v292_v20  ;;  %310 = vst [vmem:[#allocation7 + $0x4] sm:$0xf] %v308_v21 }
  0x20   : > { %317 = vst [vmem:[#allocation7 + $0x8] sm:$0xf] %v315_v22 }
  0x26   : > { %v596_v23 = vld [vmem:[#allocation7] sm:$0xff]  }
  0x27   : > { %v597_v24 = vld [vmem:[#allocation7 + $0x8] ss:$0 sps:$4 sm:$0x11]   ;;  %562 = vmatprep.mubr.msk.bf16.mxu0 %vm365_vm2, %v596_v23 }
  0x28   : > { %563 = vmatmul.mubr.msk.bf16.vlgmr.msra.gmra.mrb[0].mxu0 %vm365_vm2, %v597_v24 }
  0xfb   : > { %v564_v27 = vpop.f32.mrb[0].mxu0 }
  0xfc   : > { %v415_v28 = vadd.f32 %v564_v27, %v332_v25  ;;  %v406_v29 = vpop.f32.mrb[1].mxu0 }
  0xfd   : > { %v407_v31 = vadd.f32 %v406_v29, %v330_v26  ;;  %v565_v32 = vpop.f32.mrb[2].mxu0 }
  0xfe   : > { %424 = vst.msk [vmem:[%s254_s15 + $0x10] sm:$0x1] %vm423_vm3, %v415_v28  ;;  %v409_v33 = vpop.f32.mrb[3].mxu0 }
  0xff   : > { %421 = vst.msk [vmem:[%s254_s15] sm:$0xff] %vm420_vm4, %v407_v31  ;;  %v410_v34 = vadd.f32 %v409_v33, %v331_v30 }
 0x101   : > { %422 = vst.msk [vmem:[%s254_s15 + $0x8] sm:$0xff] %vm420_vm4, %v410_v34 }
 0x102 PF: > { %s19_s19 = sadd.s32 1, %s620_s19   ;;  %s720_s17 = smov %s616_s18 }
 0x103   : > { %p16_p5 = scmp.ge.s32.totalorder %s19_s19, 4   ;;  %s721_s18 = smov %s723_s3 }
 0x105   :  { %18 = sbr.rel (!%p16_p5) target bundleno = 3 (0x3), region = 69 }

</bundles_post_ra>
